<compile_context>
chip_gen: v7x
topology: tpu7x:2x2x1
jax: 0.10.0
libtpu: 0.0.40
codegen_flags: <defaults>
</compile_context>

<pallas_src>
import jax
import jax.numpy as jnp
from jax.experimental import pallas as pl
from jax.experimental.pallas import tpu as pltpu


def _continuous_output_kernel(x_ref, w_ref, b_ref, out_ref):
    x = x_ref[...]                                            # [B, H]
    # Single fused matmul on the MXU, f32 accumulation.
    y = jnp.dot(x, w_ref[...],
                preferred_element_type=jnp.float32) + b_ref[...]   # [B, 2A]
    a = w_ref.shape[1] // 2
    # Column mask: columns >= A belong to the std head -> sigmoid + 1e-6.
    col = jax.lax.broadcasted_iota(jnp.int32, y.shape, dimension=1)
    std = jax.nn.sigmoid(y) + 1e-6                            # EUP path, free slot here
    out_ref[...] = jnp.where(col >= a, std, y).astype(out_ref.dtype)


def continuous_output(x, w_mean, b_mean, w_std, b_std):
    """x: [B, H]; w_*: [H, A]; b_*: [1, A]  ->  [B, 2*A]  (mean | sigmoid(std)+1e-6)"""
    B, H = x.shape
    A = w_mean.shape[1]

    # Fuse the two heads once in the wrapper (one-time prep, outside the kernel).
    w_cat = jnp.concatenate([w_mean, w_std], axis=1)          # [H, 2A]
    b_cat = jnp.concatenate([b_mean, b_std], axis=1)          # [1, 2A]

    # No grid: everything fits comfortably in VMEM at these shapes; whole-array
    # blocks avoid the per-grid-step pipeline overhead.
    # TODO(synk): if B/H/A scale up, add a parallel batch grid axis (v7x 2 TCs)
    # and tile the hidden dim with an f32 accumulator (v7x 64 MiB VMEM).
    return pl.pallas_call(
        _continuous_output_kernel,
        out_shape=jax.ShapeDtypeStruct((B, 2 * A), jnp.float32),
        in_specs=[
            pl.BlockSpec(memory_space=pltpu.MemorySpace.VMEM),
            pl.BlockSpec(memory_space=pltpu.MemorySpace.VMEM),
            pl.BlockSpec(memory_space=pltpu.MemorySpace.VMEM),
        ],
        out_specs=pl.BlockSpec(memory_space=pltpu.MemorySpace.VMEM),
    )(x, w_cat, b_cat)


def reference(x, w_mean, b_mean, w_std, b_std):
    mean = x @ w_mean + b_mean
    std = jax.nn.sigmoid(x @ w_std + b_std) + 1e-6
    return jnp.concatenate([mean, std], axis=-1)


if __name__ == "__main__":
    # act_space: 1D Box with shape (4,); hidden_size = 32; batch = 8
    B, H, A = 8, 32, 4

    key = jax.random.PRNGKey(0)
    kx, k1, k2, k3, k4 = jax.random.split(key, 5)

    # Deterministic init mimicking nn.Linear default (uniform ±1/sqrt(H)).
    bound = 1.0 / (H ** 0.5)
    x = jax.random.normal(kx, (B, H), dtype=jnp.float32)
    w_mean = jax.random.uniform(k1, (H, A), jnp.float32, -bound, bound)
    b_mean = jax.random.uniform(k2, (1, A), jnp.float32, -bound, bound)
    w_std = jax.random.uniform(k3, (H, A), jnp.float32, -bound, bound)
    b_std = jax.random.uniform(k4, (1, A), jnp.float32, -bound, bound)

    out = continuous_output(x, w_mean, b_mean, w_std, b_std)
    out = jax.block_until_ready(out)

    ref = reference(x, w_mean, b_mean, w_std, b_std)
    assert out.shape == (B, 2 * A), out.shape
    assert jnp.allclose(out, ref, atol=1e-5, rtol=1e-5), \
        f"max abs err {jnp.max(jnp.abs(out - ref))}"

    print("KERNEL_OK")
</pallas_src>

<mosaic_0001>
module attributes {stable_mosaic.version = 11 : i64} {
  func.func @_continuous_output_kernel(%arg0: memref<8x32xf32, #tpu.memory_space<vmem>>, %arg1: memref<32x8xf32, #tpu.memory_space<vmem>>, %arg2: memref<1x8xf32, #tpu.memory_space<vmem>>, %arg3: memref<8x8xf32, #tpu.memory_space<vmem>>) attributes {dimension_semantics = [], scalar_prefetch = 0 : i64, scratch_operands = 0 : i64, tpu.core_type = #tpu.core_type<tc>} {
    %c0 = arith.constant 0 : index
    %c0_0 = arith.constant 0 : index
    %0 = vector.load %arg0[%c0, %c0_0] : memref<8x32xf32, #tpu.memory_space<vmem>>, vector<8x32xf32>
    %c0_1 = arith.constant 0 : index
    %c0_2 = arith.constant 0 : index
    %1 = vector.load %arg1[%c0_1, %c0_2] : memref<32x8xf32, #tpu.memory_space<vmem>>, vector<32x8xf32>
    %cst = arith.constant dense<0.000000e+00> : vector<8x8xf32>
    %2 = tpu.matmul %0, %1, %cst {dimension_numbers = #tpu.dot_dimension_numbers<[1], [0], [0], [1], [0, 0, 1, 1], [], []>} : vector<8x32xf32>, vector<32x8xf32>, vector<8x8xf32> -> vector<8x8xf32>
    %c0_3 = arith.constant 0 : index
    %c0_4 = arith.constant 0 : index
    %3 = vector.load %arg2[%c0_3, %c0_4] : memref<1x8xf32, #tpu.memory_space<vmem>>, vector<1x8xf32>
    %4 = vector.broadcast %3 : vector<1x8xf32> to vector<8x8xf32>
    %5 = arith.addf %2, %4 : vector<8x8xf32>
    %6 = tpu.iota {dimensions = array<i32: 1>} : vector<8x8xi32>
    %7 = arith.negf %5 : vector<8x8xf32>
    %8 = math.exp %7 : vector<8x8xf32>
    %cst_5 = arith.constant 1.000000e+00 : f32
    %9 = vector.broadcast %cst_5 : f32 to vector<8x8xf32>
    %10 = arith.addf %9, %8 : vector<8x8xf32>
    %11 = arith.divf %9, %10 : vector<8x8xf32>
    %cst_6 = arith.constant 9.99999997E-7 : f32
    %12 = vector.broadcast %cst_6 : f32 to vector<8x8xf32>
    %13 = arith.addf %11, %12 : vector<8x8xf32>
    %c4_i32 = arith.constant 4 : i32
    %14 = vector.broadcast %c4_i32 : i32 to vector<8x8xi32>
    %15 = arith.cmpi sge, %6, %14 : vector<8x8xi32>
    %16 = arith.select %15, %13, %5 : vector<8x8xi1>, vector<8x8xf32>
    %c0_7 = arith.constant 0 : index
    %c0_8 = arith.constant 0 : index
    %17 = vector.load %arg3[%c0_7, %c0_8] : memref<8x8xf32, #tpu.memory_space<vmem>>, vector<8x8xf32>
    tpu.vector_store %arg3[%c0_7, %c0_8], %16 {strides = array<i32>} : memref<8x8xf32, #tpu.memory_space<vmem>>, vector<8x8xf32>,
    return
  }
}

</mosaic_0001>

<bundles_post_ra>
// kernel: tpu_custom_call.1
= control target key start
LH: loop header
LB: loop body
LE: loop exit
PB: predicated region body
PF: predicated region fallthrough
CT: control target
= control target key end

     0   :  { %v185_v3 = vmov 0.0|0.0   ;;  %vm186_vm0 = vmmov 0   ;;  %v187_v6 = vmov 0.0   ;;  %s239_s0 = inlined_call_operand.vmem [shape: f32[8,32], index: 0, kind: input, shape index: {}]   ;;  %s240_s1 = inlined_call_operand.vmem [shape: f32[32,8], index: 1, kind: input, shape index: {}]   ;;  %s241_s2 = inlined_call_operand.vmem [shape: f32[1,8], index: 2, kind: input, shape index: {}]   ;;  %s242_s3 = inlined_call_operand.hbm [shape: f32[8,8], index: 3, kind: output, shape index: {}]  }
   0x1   :  { %v16_v0 = vld [vmem:[%s240_s1] sm:$0xff]  ;;  %v17_v1 = vld [vmem:[%s240_s1 + $0x8] sm:$0xff]  ;;  %v18_v2 = vld [vmem:[%s240_s1 + $0x10] sm:$0xff]  ;;  %147 = vmatprep.subr.bf16.mxu0 %v185_v3  ;;  %144 = vmatprep.mubr.msk.f32.mxu0 %vm186_vm0, %v187_v6 }
   0x2   :  { %v148_v4 = vpack.c.bf16 %v17_v1, %v16_v0  ;;  %v19_v5 = vld [vmem:[%s240_s1 + $0x18] sm:$0xff] }
   0x3   :  { %8 = vsyncpa [#allocation3], 0  ;;  %v151_v7 = vpack.c.bf16 %v19_v5, %v18_v2  ;;  %v15_v8 = vld [vmem:[%s239_s0] sm:$0xff]  ;;  %vm27_vm1 = vcmask 261120   ;;  %v101_v16 = vlaneseq  ;;  %s188_s1 = smov [#allocation2]   ;;  %vm112_vm3 = vcmask 64512  }
   0x4   :  { %149 = vmatpush3.bf16.msra.mxu0 %v148_v4  ;;  %v128_v9 = vld [vmem:[%s241_s2] ss:$0 sm:$0xff]  ;;  %s120_s24 = sshll.u32 %s188_s1, 4  ;;  %s121_s24 = int_to_ptr.vmem [resolvable:$true] %s120_s24 }
   0x5   :  { %150 = vmatprep.subr.bf16.mxu0 %v185_v3  ;;  %v102_v17 = vand.u32 127, %v101_v16  ;;  %s161_s0 = scalar_lea.vmem %s121_s24, 128  ;;  %p166_p1 = scmp.lt.s32.totalorder %s121_s24, %s121_s24 }
   0x6   :  { %p162_p0 = scmp.ne.s32.totalorder %s121_s24, %s161_s0  ;;  %p167_p2 = scmp.lt.s32.totalorder %s161_s0, %s161_s0 }
   0x7   :  { %vm110_vm2 = vcmp.ge.s32.totalorder %v102_v17, 4 }
   0x8   :  { %152 = vmatpush3.bf16.msra.mxu0 %v151_v7  ;;  %p168_p3 = por %p167_p2, %p166_p1 }
   0xa   :  { %p169_p4 = pnand %p168_p3, %p162_p0 }
   0xb   :  { %145 = vmatmul.mubr.msk.f32.vlgmr.msra.gmra.mrb[0].mxu0 %vm27_vm1, %v15_v8 }
  0xde   :  { %v97_v10 = vpop.f32.mrb[0].mxu0 }
  0xdf   :  { %v98_v11 = vadd.f32 %v128_v9, %v97_v10  ;;  %v146_v12 = vpop.f32.mrb[1].mxu0 }
  0xe1   :  { %v130_v13 = vmul.f32 -1.442695, %v98_v11 }
  0xe3   :  { %157 = vpow2.f32 %v130_v13 }
  0xed   :  { %v158_v14 = vpop.eup %157 }
  0xee   :  { %v106_v15 = vadd.f32 1.0, %v158_v14 }
  0xf0   :  { %159 = vrcp.f32 %v106_v15 }
  0xfa   :  { %v160_v18 = vpop.eup %159 }
  0xfb   :  { %v109_v19 = vadd.f32 1e-06, %v160_v18 }
  0xfd   :  { %v111_v20 = vsel %vm110_vm2, %v109_v19, %v98_v11 }
  0xfe   :  { %113 = vst.msk [vmem:[#allocation2] sm:$0xff] %vm112_vm3, %v111_v20 }
  0xff   :  { %172 = shalt.err (!%p169_p4)
}
 0x100   :  { %s173_s26 = scalar_lea.hbm %s242_s3, 128 }
 0x101   :  { %p174_p5 = scmp.ne.s32.totalorder %s242_s3, %s173_s26  ;;  %p177_p6 = scmp.lt.u32.totalorder %s173_s26, %s242_s3 }
 0x103   :  { %p179_p7 = pnand %p177_p6, %p174_p5 }
 0x105   :  { %182 = shalt.err (!%p179_p7)
}
 0x106   :  { %123 = dma.vmem_to_hbm [thread:$0]  %s121_s24, 128, %s242_s3, [#allocation3]  }
 0x107   :  { %183 = dma.done.wait [#allocation3], 128  }
 0x108   :  { %184 = vsyncadd [#allocation3], 4294967168 }
 0x109   :  { %127 = vsyncpa [#allocation3], 1 }

</bundles_post_ra>
